<compile_context>
chip_gen: v6e
topology: v6e:2x2x1
jax: 0.10.0
libtpu: 0.0.40
codegen_flags: <defaults>
</compile_context>

<pallas_src>
import jax
import jax.numpy as jnp
from jax.experimental import pallas as pl
from jax.experimental.pallas import tpu as pltpu


def _mlp_kernel(x_ref, t_ref, w1x_ref, w1t_ref, b1_ref, w2_ref, b2_ref,
                w3_ref, b3_ref, o_ref):
    mxu_dtype = w1x_ref.dtype
    x = x_ref[...]
    # Layer 1: MXU matmul over the F real input columns + rank-1 t update on the VPU (f32).
    h = jnp.dot(x.astype(mxu_dtype), w1x_ref[...],
                preferred_element_type=jnp.float32)
    h = h + t_ref[...] * w1t_ref[...] + b1_ref[...]        # (tile,1)*(1,H) broadcast, all f32
    h = jnp.maximum(h, 0.0)
    # Layer 2
    h = jnp.dot(h.astype(mxu_dtype), w2_ref[...],
                preferred_element_type=jnp.float32) + b2_ref[...]
    h = jnp.maximum(h, 0.0)
    # Layer 3 (output columns padded to a lane-dense multiple of 128)
    y = jnp.dot(h.astype(mxu_dtype), w3_ref[...],
                preferred_element_type=jnp.float32) + b3_ref[...]
    o_ref[...] = y.astype(o_ref.dtype)


def denoise_mlp_forward(x, t, params, *, batch_tile=512, matmul_dtype=jnp.float32):
    """x: (B, F) float32, t: (B,) int/float timesteps. Returns (B, F) float32."""
    w1, b1, w2, b2, w3, b3 = params          # w1: (F+1, H), w2: (H, H), w3: (H, F)
    B, F = x.shape
    hid = w1.shape[1]

    batch_tile = min(batch_tile, B)
    assert B % batch_tile == 0, "batch must be divisible by batch_tile"

    # t -> scaled column (B, 1), matching torch: t.unsqueeze(1).float() / 1000
    t_col = (t.astype(jnp.float32) / 1000.0).reshape(B, 1)

    # Split W1 so layer 1 needs no concat: x @ W1[:F] + t_scaled * W1[F:F+1].
    w1x = w1[:F, :].astype(matmul_dtype)
    w1t = w1[F:F + 1, :].astype(jnp.float32)   # elementwise operand: keep f32

    # Lane-dense output: pad last layer to a multiple of 128 output columns.
    F_pad = max(128, pl.cdiv(F, 128) * 128)
    w3p = jnp.pad(w3, ((0, 0), (0, F_pad - F))).astype(matmul_dtype)
    b3p = jnp.pad(b3, ((0, 0), (0, F_pad - F))).astype(jnp.float32)

    w2c = w2.astype(matmul_dtype)

    grid = (B // batch_tile,)

    out = pl.pallas_call(
        _mlp_kernel,
        out_shape=jax.ShapeDtypeStruct((B, F_pad), jnp.float32),
        grid_spec=pltpu.PrefetchScalarGridSpec(
            num_scalar_prefetch=0,
            grid=grid,
            in_specs=[
                pl.BlockSpec((batch_tile, F), lambda i: (i, 0)),   # x tile
                pl.BlockSpec((batch_tile, 1), lambda i: (i, 0)),   # t column tile
                pl.BlockSpec((F, hid),        lambda i: (0, 0)),   # W1[:F]
                pl.BlockSpec((1, hid),        lambda i: (0, 0)),   # W1[F] (rank-1 t row)
                pl.BlockSpec((1, hid),        lambda i: (0, 0)),   # b1
                pl.BlockSpec((hid, hid),      lambda i: (0, 0)),   # W2
                pl.BlockSpec((1, hid),        lambda i: (0, 0)),   # b2
                pl.BlockSpec((hid, F_pad),    lambda i: (0, 0)),   # W3 (padded)
                pl.BlockSpec((1, F_pad),      lambda i: (0, 0)),   # b3 (padded)
            ],
            out_specs=pl.BlockSpec((batch_tile, F_pad), lambda i: (i, 0)),
        ),
        compiler_params=pltpu.CompilerParams(
            dimension_semantics=("parallel",),   # batch axis megacore-shards on v7x
        ),
    )(x, t_col, w1x, w1t, b1.astype(jnp.float32), w2c,
      b2.astype(jnp.float32), w3p, b3p)

    return out[:, :F]


def init_params(key, feature_dim, hidden=128):
    """Deterministic synthetic init (uniform, PyTorch-like fan_in scaling)."""
    ks = jax.random.split(key, 6)
    in_dim = feature_dim + 1

    def lin(kw, kb, fan_in, fan_out):
        bound = 1.0 / jnp.sqrt(fan_in)
        w = jax.random.uniform(kw, (fan_in, fan_out), jnp.float32, -bound, bound)
        b = jax.random.uniform(kb, (1, fan_out), jnp.float32, -bound, bound)
        return w, b

    w1, b1 = lin(ks[0], ks[1], in_dim, hidden)
    w2, b2 = lin(ks[2], ks[3], hidden, hidden)
    w3, b3 = lin(ks[4], ks[5], hidden, feature_dim)
    return (w1, b1, w2, b2, w3, b3)


def _reference(x, t, params):
    w1, b1, w2, b2, w3, b3 = params
    t_col = (t.astype(jnp.float32) / 1000.0).reshape(-1, 1)
    h = jnp.concatenate([x, t_col], axis=1)
    h = jnp.maximum(h @ w1 + b1, 0.0)
    h = jnp.maximum(h @ w2 + b2, 0.0)
    return h @ w3 + b3


if __name__ == "__main__":
    key = jax.random.PRNGKey(0)
    k_x, k_t, k_p, k_x2, k_t2 = jax.random.split(key, 5)

    feature_dim = 32
    params = init_params(k_p, feature_dim)

    # Small shapes (grid = 1): matches the module's expected usage.
    batch = 8
    x = jax.random.normal(k_x, (batch, feature_dim), dtype=jnp.float32)
    t = jax.random.randint(k_t, (batch,), 0, 1000)           # integer timesteps, like diffusion

    out = jax.block_until_ready(denoise_mlp_forward(x, t, params))
    ref = _reference(x, t, params)
    assert out.shape == (batch, feature_dim)
    assert jnp.allclose(out, ref, atol=1e-5, rtol=1e-5), "f32 mismatch vs reference (small batch)"

    # Larger batch exercises grid > 1 (pipelined 512-row tiles; megacore sharding on v7x).
    batch2 = 1024
    x2 = jax.random.normal(k_x2, (batch2, feature_dim), dtype=jnp.float32)
    t2 = jax.random.randint(k_t2, (batch2,), 0, 1000)
    out2 = jax.block_until_ready(denoise_mlp_forward(x2, t2, params, batch_tile=512))
    ref2 = _reference(x2, t2, params)
    assert jnp.allclose(out2, ref2, atol=1e-5, rtol=1e-5), "f32 mismatch vs reference (tiled batch)"

    # Optional bf16 MXU path (weights/activations bf16 into the dots, elementwise stays f32).
    out_bf16 = jax.block_until_ready(
        denoise_mlp_forward(x, t, params, matmul_dtype=jnp.bfloat16))
    assert jnp.allclose(out_bf16, ref, atol=5e-2, rtol=5e-2), "bf16 path too far from reference"

    print("KERNEL_OK")
</pallas_src>

<mosaic_0001>
module attributes {stable_mosaic.version = 11 : i64} {
  func.func @_mlp_kernel(%arg0: i32, %arg1: memref<8x32xf32, #tpu.memory_space<vmem>>, %arg2: memref<8x1xf32, #tpu.memory_space<vmem>>, %arg3: memref<32x128xf32, #tpu.memory_space<vmem>>, %arg4: memref<1x128xf32, #tpu.memory_space<vmem>>, %arg5: memref<1x128xf32, #tpu.memory_space<vmem>>, %arg6: memref<128x128xf32, #tpu.memory_space<vmem>>, %arg7: memref<1x128xf32, #tpu.memory_space<vmem>>, %arg8: memref<128x128xf32, #tpu.memory_space<vmem>>, %arg9: memref<1x128xf32, #tpu.memory_space<vmem>>, %arg10: memref<8x128xf32, #tpu.memory_space<vmem>>) attributes {dimension_semantics = [#tpu.dimension_semantics<parallel>], iteration_bounds = array<i64: 1>, scalar_prefetch = 0 : i64, scratch_operands = 0 : i64, tpu.core_type = #tpu.core_type<tc>, window_params = [{transform_indices = @transform_0, window_bounds = array<i64: 8, 32>}, {transform_indices = @transform_1, window_bounds = array<i64: 8, 1>}, {pipeline_mode = #tpu.pipeline_mode<synchronous>, transform_indices = @transform_2, window_bounds = array<i64: 32, 128>}, {pipeline_mode = #tpu.pipeline_mode<synchronous>, transform_indices = @transform_3, window_bounds = array<i64: 1, 128>}, {pipeline_mode = #tpu.pipeline_mode<synchronous>, transform_indices = @transform_4, window_bounds = array<i64: 1, 128>}, {pipeline_mode = #tpu.pipeline_mode<synchronous>, transform_indices = @transform_5, window_bounds = array<i64: 128, 128>}, {pipeline_mode = #tpu.pipeline_mode<synchronous>, transform_indices = @transform_6, window_bounds = array<i64: 1, 128>}, {pipeline_mode = #tpu.pipeline_mode<synchronous>, transform_indices = @transform_7, window_bounds = array<i64: 128, 128>}, {pipeline_mode = #tpu.pipeline_mode<synchronous>, transform_indices = @transform_8, window_bounds = array<i64: 1, 128>}, {transform_indices = @transform_9, window_bounds = array<i64: 8, 128>}]} {
    %c0 = arith.constant 0 : index
    %c0_0 = arith.constant 0 : index
    %0 = vector.load %arg1[%c0, %c0_0] : memref<8x32xf32, #tpu.memory_space<vmem>>, vector<8x32xf32>
    %c0_1 = arith.constant 0 : index
    %c0_2 = arith.constant 0 : index
    %1 = vector.load %arg3[%c0_1, %c0_2] : memref<32x128xf32, #tpu.memory_space<vmem>>, vector<32x128xf32>
    %cst = arith.constant dense<0.000000e+00> : vector<8x128xf32>
    %2 = tpu.matmul %0, %1, %cst {dimension_numbers = #tpu.dot_dimension_numbers<[1], [0], [0], [1], [0, 0, 1, 1], [], []>} : vector<8x32xf32>, vector<32x128xf32>, vector<8x128xf32> -> vector<8x128xf32>
    %c0_3 = arith.constant 0 : index
    %c0_4 = arith.constant 0 : index
    %3 = vector.load %arg2[%c0_3, %c0_4] : memref<8x1xf32, #tpu.memory_space<vmem>>, vector<8x1xf32>
    %c0_5 = arith.constant 0 : index
    %c0_6 = arith.constant 0 : index
    %4 = vector.load %arg4[%c0_5, %c0_6] : memref<1x128xf32, #tpu.memory_space<vmem>>, vector<1x128xf32>
    %5 = vector.broadcast %3 : vector<8x1xf32> to vector<8x128xf32>
    %6 = vector.broadcast %4 : vector<1x128xf32> to vector<8x128xf32>
    %7 = arith.mulf %5, %6 : vector<8x128xf32>
    %8 = arith.addf %2, %7 : vector<8x128xf32>
    %c0_7 = arith.constant 0 : index
    %c0_8 = arith.constant 0 : index
    %9 = vector.load %arg5[%c0_7, %c0_8] : memref<1x128xf32, #tpu.memory_space<vmem>>, vector<1x128xf32>
    %10 = vector.broadcast %9 : vector<1x128xf32> to vector<8x128xf32>
    %11 = arith.addf %8, %10 : vector<8x128xf32>
    %cst_9 = arith.constant 0.000000e+00 : f32
    %12 = vector.broadcast %cst_9 : f32 to vector<8x128xf32>
    %13 = arith.maximumf %11, %12 : vector<8x128xf32>
    %c0_10 = arith.constant 0 : index
    %c0_11 = arith.constant 0 : index
    %14 = vector.load %arg6[%c0_10, %c0_11] : memref<128x128xf32, #tpu.memory_space<vmem>>, vector<128x128xf32>
    %cst_12 = arith.constant dense<0.000000e+00> : vector<8x128xf32>
    %15 = tpu.matmul %13, %14, %cst_12 {dimension_numbers = #tpu.dot_dimension_numbers<[1], [0], [0], [1], [0, 0, 1, 1], [], []>} : vector<8x128xf32>, vector<128x128xf32>, vector<8x128xf32> -> vector<8x128xf32>
    %c0_13 = arith.constant 0 : index
    %c0_14 = arith.constant 0 : index
    %16 = vector.load %arg7[%c0_13, %c0_14] : memref<1x128xf32, #tpu.memory_space<vmem>>, vector<1x128xf32>
    %17 = vector.broadcast %16 : vector<1x128xf32> to vector<8x128xf32>
    %18 = arith.addf %15, %17 : vector<8x128xf32>
    %cst_15 = arith.constant 0.000000e+00 : f32
    %19 = vector.broadcast %cst_15 : f32 to vector<8x128xf32>
    %20 = arith.maximumf %18, %19 : vector<8x128xf32>
    %c0_16 = arith.constant 0 : index
    %c0_17 = arith.constant 0 : index
    %21 = vector.load %arg8[%c0_16, %c0_17] : memref<128x128xf32, #tpu.memory_space<vmem>>, vector<128x128xf32>
    %cst_18 = arith.constant dense<0.000000e+00> : vector<8x128xf32>
    %22 = tpu.matmul %20, %21, %cst_18 {dimension_numbers = #tpu.dot_dimension_numbers<[1], [0], [0], [1], [0, 0, 1, 1], [], []>} : vector<8x128xf32>, vector<128x128xf32>, vector<8x128xf32> -> vector<8x128xf32>
    %c0_19 = arith.constant 0 : index
    %c0_20 = arith.constant 0 : index
    %23 = vector.load %arg9[%c0_19, %c0_20] : memref<1x128xf32, #tpu.memory_space<vmem>>, vector<1x128xf32>
    %24 = vector.broadcast %23 : vector<1x128xf32> to vector<8x128xf32>
    %25 = arith.addf %22, %24 : vector<8x128xf32>
    %c0_21 = arith.constant 0 : index
    %c0_22 = arith.constant 0 : index
    %26 = vector.load %arg10[%c0_21, %c0_22] : memref<8x128xf32, #tpu.memory_space<vmem>>, vector<8x128xf32>
    tpu.vector_store %arg10[%c0_21, %c0_22], %25 {strides = array<i32>} : memref<8x128xf32, #tpu.memory_space<vmem>>, vector<8x128xf32>,
    return
  }
  func.func @transform_0(%arg0: i32) -> (i32, i32) {
    %c0_i32 = arith.constant 0 : i32
    %c0_i32_0 = arith.constant 0 : i32
    return %arg0, %c0_i32 : i32, i32
  }
  func.func @transform_1(%arg0: i32) -> (i32, i32) {
    %c0_i32 = arith.constant 0 : i32
    %c0_i32_0 = arith.constant 0 : i32
    return %arg0, %c0_i32 : i32, i32
  }
  func.func @transform_2(%arg0: i32) -> (i32, i32) {
    %c0_i32 = arith.constant 0 : i32
    %c0_i32_0 = arith.constant 0 : i32
    %c0_i32_1 = arith.constant 0 : i32
    return %c0_i32, %c0_i32_0 : i32, i32
  }
  func.func @transform_3(%arg0: i32) -> (i32, i32) {
    %c0_i32 = arith.constant 0 : i32
    %c0_i32_0 = arith.constant 0 : i32
    %c0_i32_1 = arith.constant 0 : i32
    return %c0_i32, %c0_i32_0 : i32, i32
  }
  func.func @transform_4(%arg0: i32) -> (i32, i32) {
    %c0_i32 = arith.constant 0 : i32
    %c0_i32_0 = arith.constant 0 : i32
    %c0_i32_1 = arith.constant 0 : i32
    return %c0_i32, %c0_i32_0 : i32, i32
  }
  func.func @transform_5(%arg0: i32) -> (i32, i32) {
    %c0_i32 = arith.constant 0 : i32
    %c0_i32_0 = arith.constant 0 : i32
    %c0_i32_1 = arith.constant 0 : i32
    return %c0_i32, %c0_i32_0 : i32, i32
  }
  func.func @transform_6(%arg0: i32) -> (i32, i32) {
    %c0_i32 = arith.constant 0 : i32
    %c0_i32_0 = arith.constant 0 : i32
    %c0_i32_1 = arith.constant 0 : i32
    return %c0_i32, %c0_i32_0 : i32, i32
  }
  func.func @transform_7(%arg0: i32) -> (i32, i32) {
    %c0_i32 = arith.constant 0 : i32
    %c0_i32_0 = arith.constant 0 : i32
    %c0_i32_1 = arith.constant 0 : i32
    return %c0_i32, %c0_i32_0 : i32, i32
  }
  func.func @transform_8(%arg0: i32) -> (i32, i32) {
    %c0_i32 = arith.constant 0 : i32
    %c0_i32_0 = arith.constant 0 : i32
    %c0_i32_1 = arith.constant 0 : i32
    return %c0_i32, %c0_i32_0 : i32, i32
  }
  func.func @transform_9(%arg0: i32) -> (i32, i32) {
    %c0_i32 = arith.constant 0 : i32
    %c0_i32_0 = arith.constant 0 : i32
    return %arg0, %c0_i32 : i32, i32
  }
}

</mosaic_0001>

<bundles_post_ra>
// kernel: tpu_custom_call.1
= control target key start
LH: loop header
LB: loop body
LE: loop exit
PB: predicated region body
PF: predicated region fallthrough
CT: control target
= control target key end

     0   :  { %14 = vsyncpa [#allocation3], 0  ;;  %s732_s0 = inlined_call_operand.vmem [shape: f32[8,32], index: 0, kind: input, shape index: {}]   ;;  %s733_s1 = inlined_call_operand.vmem [shape: f32[8,1], index: 1, kind: input, shape index: {}]   ;;  %s734_s2 = inlined_call_operand.hbm [shape: f32[32,128], index: 2, kind: input, shape index: {}]   ;;  %s735_s3 = inlined_call_operand.vmem [shape: f32[1,128], index: 3, kind: input, shape index: {}]   ;;  %s736_s4 = inlined_call_operand.vmem [shape: f32[1,128], index: 4, kind: input, shape index: {}]   ;;  %s737_s5 = inlined_call_operand.hbm [shape: f32[128,128], index: 5, kind: input, shape index: {}]   ;;  %s738_s6 = inlined_call_operand.vmem [shape: f32[1,128], index: 6, kind: input, shape index: {}]   ;;  %s739_s7 = inlined_call_operand.hbm [shape: f32[128,128], index: 7, kind: input, shape index: {}]   ;;  %s740_s8 = inlined_call_operand.vmem [shape: f32[1,128], index: 8, kind: input, shape index: {}]   ;;  %s741_s9 = inlined_call_operand.hbm [shape: f32[8,128], index: 9, kind: output, shape index: {}]  }
   0x1   :  { %15 = vsyncpa [#allocation6], 0 }
   0x2   :  { %16 = vsyncpa [#allocation4], 0  ;;  %s601_s30 = smov [#allocation5]   ;;  %s602_s11 = smov [#allocation2]  }
   0x3   :  { %s42_s10 = sshll.u32 %s601_s30, 4  ;;  %s26_s12 = sshll.u32 %s602_s11, 4  ;;  %s43_s10 = int_to_ptr.vmem [resolvable:$true] %s42_s10  ;;  %s27_s12 = int_to_ptr.vmem [resolvable:$true] %s26_s12 }
   0x4   :  { %s523_s13 = scalar_lea.vmem %s43_s10, 2048  ;;  %p528_p1 = scmp.lt.s32.totalorder %s43_s10, %s43_s10 }
   0x5   :  { %p524_p0 = scmp.ne.s32.totalorder %s43_s10, %s523_s13  ;;  %p529_p2 = scmp.lt.s32.totalorder %s523_s13, %s523_s13 }
   0x7   :  { %p530_p3 = por %p529_p2, %p528_p1 }
   0x9   :  { %p531_p4 = pnand %p530_p3, %p524_p0 }
   0xb   :  { %534 = shalt.err (!%p531_p4)
}
   0xc   :  { %s603_s14 = smov 128   ;;  %s604_s15 = smov 8  }
   0xd   :  { %48 = dma.hbm_to_vmem [thread:$0]  %s737_s5, 2048, %s43_s10, [#allocation6], %s603_s14, %s603_s14, %s604_s15  }
   0xe   :  { %s543_s18 = scalar_lea.vmem %s27_s12, 512  ;;  %p548_p6 = scmp.lt.s32.totalorder %s27_s12, %s27_s12 }
   0xf   :  { %p544_p5 = scmp.ne.s32.totalorder %s27_s12, %s543_s18  ;;  %p549_p7 = scmp.lt.s32.totalorder %s543_s18, %s543_s18 }
  0x11   :  { %p550_p8 = por %p549_p7, %p548_p6 }
  0x13   :  { %p551_p9 = pnand %p550_p8, %p544_p5 }
  0x15   :  { %554 = shalt.err (!%p551_p9)
}
  0x16   :  { %32 = dma.hbm_to_vmem [thread:$0]  %s734_s2, 512, %s27_s12, [#allocation3], %s603_s14, %s603_s14, %s604_s15  }
  0x17   :  { %s605_s21 = smov [#allocation7]  }
  0x18   :  { %s56_s22 = sshll.u32 %s605_s21, 4  ;;  %s57_s22 = int_to_ptr.vmem [resolvable:$true] %s56_s22 }
  0x19   :  { %s563_s23 = scalar_lea.vmem %s57_s22, 2048  ;;  %p568_p11 = scmp.lt.s32.totalorder %s57_s22, %s57_s22 }
  0x1a   :  { %p564_p10 = scmp.ne.s32.totalorder %s57_s22, %s563_s23  ;;  %p569_p12 = scmp.lt.s32.totalorder %s563_s23, %s563_s23 }
  0x1c   :  { %p570_p13 = por %p569_p12, %p568_p11 }
  0x1e   :  { %p571_p0 = pnand %p570_p13, %p564_p10 }
  0x20   :  { %574 = shalt.err (!%p571_p0)
}
  0x21   :  { %62 = dma.hbm_to_vmem [thread:$0]  %s739_s7, 2048, %s57_s22, [#allocation6], %s603_s14, %s603_s14, %s604_s15  }
  0x22   :  { %595 = dma.done.wait [#allocation3], 512  }
  0x23   :  { %596 = vsyncadd [#allocation3], 4294966784 }
  0x24   :  { %597 = dma.done.wait [#allocation6], 4096  }
  0x25   :  { %598 = vsyncadd [#allocation6], 4294963200  ;;  %v606_v0 = vmov 0.0   ;;  %vm607_vm0 = vmmov 0   ;;  %v608_v1 = vmov 0   ;;  %v78_v2 = vld [vmem:[#allocation2 + $0x18] sm:$0xff] }
  0x26   :  { %424 = vmatprep.subr.mxu0 %v606_v0  ;;  %432 = vmatprep.mubr.msk.f32.mxu0 %vm607_vm0, %v606_v0  ;;  %v77_v3 = vld [vmem:[#allocation2 + $0x10] sm:$0xff]  ;;  %v79_v4 = vld [vmem:[%s733_s1] sm:$0xff]  ;;  %v76_v5 = vld [vmem:[#allocation2 + $0x8] sm:$0xff]  ;;  %vm93_vm1 = vcmask 261120   ;;  %s609_s10 = smov [#allocation8]  }
  0x27   :  { %514 = vset.pattern.permute.xlu0 %v608_v1  ;;  %435 = vmatprep.subr.mxu1 %v606_v0  ;;  %v191_v6 = vld [vmem:[#allocation5 + $0x78] sm:$0xff]  ;;  %v190_v7 = vld [vmem:[#allocation5 + $0x70] sm:$0xff]  ;;  %v75_v8 = vld [vmem:[#allocation2] sm:$0xff]  ;;  %s370_s11 = sshll.u32 %s609_s10, 4  ;;  %s371_s11 = int_to_ptr.vmem [resolvable:$true] %s370_s11 }
  0x28   :  { %467 = vmatprep.mubr.msk.f32.mxu1 %vm607_vm0, %v606_v0  ;;  %425 = vmatpush3.msra.mxu0 %v78_v2  ;;  %v189_v9 = vld [vmem:[#allocation5 + $0x68] sm:$0xff]  ;;  %v74_v10 = vld [vmem:[%s732_s0] sm:$0xff]  ;;  %v187_v12 = vld [vmem:[#allocation5 + $0x58] sm:$0xff]  ;;  %s575_s12 = scalar_lea.vmem %s371_s11, 128  ;;  %p580_p2 = scmp.lt.s32.totalorder %s371_s11, %s371_s11 }
  0x29   :  { %426 = vmatprep.subr.mxu0 %v606_v0  ;;  %83 = vperm.xlu0 %514, %v79_v4   ;;  %v188_v11 = vld [vmem:[#allocation5 + $0x60] sm:$0xff]  ;;  %v186_v13 = vld [vmem:[#allocation5 + $0x50] sm:$0xff]  ;;  %v185_v14 = vld [vmem:[#allocation5 + $0x48] sm:$0xff]  ;;  %p576_p1 = scmp.ne.s32.totalorder %s371_s11, %s575_s12  ;;  %p581_p3 = scmp.lt.s32.totalorder %s575_s12, %s575_s12 }
  0x2a   :  { %427 = vmatpush3.msra.mxu0 %v77_v3  ;;  %436 = vmatpush3.msra.mxu1 %v191_v6  ;;  %v184_v15 = vld [vmem:[#allocation5 + $0x40] sm:$0xff]  ;;  %v183_v16 = vld [vmem:[#allocation5 + $0x38] sm:$0xff]  ;;  %v182_v17 = vld [vmem:[#allocation5 + $0x30] sm:$0xff] }
  0x2b   :  { %428 = vmatprep.subr.mxu0 %v606_v0  ;;  %437 = vmatprep.subr.mxu1 %v606_v0  ;;  %v181_v18 = vld [vmem:[#allocation5 + $0x28] sm:$0xff]  ;;  %v180_v19 = vld [vmem:[#allocation5 + $0x20] sm:$0xff]  ;;  %v179_v20 = vld [vmem:[#allocation5 + $0x18] sm:$0xff]  ;;  %p582_p4 = por %p581_p3, %p580_p2 }
  0x2c   :  { %429 = vmatpush3.msra.mxu0 %v76_v5  ;;  %438 = vmatpush3.msra.mxu1 %v190_v7  ;;  %v178_v21 = vld [vmem:[#allocation5 + $0x10] sm:$0xff]  ;;  %v177_v22 = vld [vmem:[#allocation5 + $0x8] sm:$0xff]  ;;  %v176_v23 = vld [vmem:[#allocation5] sm:$0xff] }
  0x2d   :  { %430 = vmatprep.subr.mxu0 %v606_v0  ;;  %439 = vmatprep.subr.mxu1 %v606_v0  ;;  %v285_v24 = vld [vmem:[#allocation7 + $0x78] sm:$0xff]  ;;  %v284_v25 = vld [vmem:[#allocation7 + $0x70] sm:$0xff]  ;;  %v283_v26 = vld [vmem:[#allocation7 + $0x68] sm:$0xff]  ;;  %p583_p5 = pnand %p582_p4, %p576_p1 }
  0x2e   :  { %431 = vmatpush3.msra.mxu0 %v75_v8  ;;  %440 = vmatpush3.msra.mxu1 %v189_v9  ;;  %v282_v27 = vld [vmem:[#allocation7 + $0x60] sm:$0xff]  ;;  %v281_v28 = vld [vmem:[#allocation7 + $0x58] sm:$0xff]  ;;  %v280_v29 = vld [vmem:[#allocation7 + $0x50] sm:$0xff] }
  0x2f   :  { %433 = vmatmul.mubr.msk.f32.vlgmr.msra.gmra.mxu0 %vm93_vm1, %v74_v10  ;;  %441 = vmatprep.subr.mxu1 %v606_v0  ;;  %v279_v30 = vld [vmem:[#allocation7 + $0x48] sm:$0xff]  ;;  %v278_v31 = vld [vmem:[#allocation7 + $0x40] sm:$0xff]  ;;  %v277_v32 = vld [vmem:[#allocation7 + $0x38] sm:$0xff] }
  0x30   :  { %442 = vmatpush3.msra.mxu1 %v188_v11  ;;  %470 = vmatprep.subr.mxu0 %v606_v0  ;;  %v276_v33 = vld [vmem:[#allocation7 + $0x30] sm:$0xff]  ;;  %v275_v34 = vld [vmem:[#allocation7 + $0x28] sm:$0xff]  ;;  %v274_v35 = vld [vmem:[#allocation7 + $0x20] sm:$0xff] }
  0x31   :  { %443 = vmatprep.subr.mxu1 %v606_v0  ;;  %502 = vmatprep.mubr.msk.f32.mxu0 %vm607_vm0, %v606_v0  ;;  %v273_v36 = vld [vmem:[#allocation7 + $0x18] sm:$0xff]  ;;  %v380_v37 = vld [vmem:[%s735_s3] ss:$0 sm:$0xff]  ;;  %v272_v46 = vld [vmem:[#allocation7 + $0x10] sm:$0xff] }
  0x32   :  { %444 = vmatpush3.msra.mxu1 %v187_v12  ;;  %471 = vmatpush3.msra.mxu0 %v285_v24  ;;  %v382_v41 = vld [vmem:[%s736_s4] ss:$0 sm:$0xff]  ;;  %v271_v47 = vld [vmem:[#allocation7 + $0x8] sm:$0xff] }
  0x33   :  { %445 = vmatprep.subr.mxu1 %v606_v0  ;;  %472 = vmatprep.subr.mxu0 %v606_v0  ;;  %v270_v48 = vld [vmem:[#allocation7] sm:$0xff] }
  0x34   :  { %446 = vmatpush3.msra.mxu1 %v186_v13  ;;  %473 = vmatpush3.msra.mxu0 %v284_v25  ;;  %v383_v49 = vld [vmem:[%s738_s6] ss:$0 sm:$0xff] }
  0x35   :  { %447 = vmatprep.subr.mxu1 %v606_v0  ;;  %474 = vmatprep.subr.mxu0 %v606_v0  ;;  %v384_v54 = vld [vmem:[%s740_s8] ss:$0 sm:$0xff] }
  0x36   :  { %448 = vmatpush3.msra.mxu1 %v185_v14  ;;  %475 = vmatpush3.msra.mxu0 %v283_v26 }
  0x37   :  { %449 = vmatprep.subr.mxu1 %v606_v0  ;;  %476 = vmatprep.subr.mxu0 %v606_v0 }
  0x38   :  { %450 = vmatpush3.msra.mxu1 %v184_v15  ;;  %477 = vmatpush3.msra.mxu0 %v282_v27 }
  0x39   :  { %451 = vmatprep.subr.mxu1 %v606_v0  ;;  %478 = vmatprep.subr.mxu0 %v606_v0 }
  0x3a   :  { %452 = vmatpush3.msra.mxu1 %v183_v16  ;;  %479 = vmatpush3.msra.mxu0 %v281_v28 }
  0x3b   :  { %453 = vmatprep.subr.mxu1 %v606_v0  ;;  %480 = vmatprep.subr.mxu0 %v606_v0 }
  0x3c   :  { %454 = vmatpush3.msra.mxu1 %v182_v17  ;;  %481 = vmatpush3.msra.mxu0 %v280_v29 }
  0x3d   :  { %455 = vmatprep.subr.mxu1 %v606_v0  ;;  %482 = vmatprep.subr.mxu0 %v606_v0 }
  0x3e   :  { %456 = vmatpush3.msra.mxu1 %v181_v18  ;;  %483 = vmatpush3.msra.mxu0 %v279_v30 }
  0x3f   :  { %457 = vmatprep.subr.mxu1 %v606_v0  ;;  %484 = vmatprep.subr.mxu0 %v606_v0 }
  0x40   :  { %458 = vmatpush3.msra.mxu1 %v180_v19  ;;  %485 = vmatpush3.msra.mxu0 %v278_v31 }
  0x41   :  { %459 = vmatprep.subr.mxu1 %v606_v0  ;;  %486 = vmatprep.subr.mxu0 %v606_v0 }
  0x42   :  { %460 = vmatpush3.msra.mxu1 %v179_v20  ;;  %487 = vmatpush3.msra.mxu0 %v277_v32 }
  0x43   :  { %461 = vmatprep.subr.mxu1 %v606_v0  ;;  %488 = vmatprep.subr.mxu0 %v606_v0 }
  0x44   :  { %462 = vmatpush3.msra.mxu1 %v178_v21  ;;  %489 = vmatpush3.msra.mxu0 %v276_v33 }
  0x45   :  { %463 = vmatprep.subr.mxu1 %v606_v0  ;;  %490 = vmatprep.subr.mxu0 %v606_v0 }
  0x46   :  { %464 = vmatpush3.msra.mxu1 %v177_v22  ;;  %491 = vmatpush3.msra.mxu0 %v275_v34 }
  0x47   :  { %465 = vmatprep.subr.mxu1 %v606_v0  ;;  %492 = vmatprep.subr.mxu0 %v606_v0 }
  0x48   :  { %466 = vmatpush3.msra.mxu1 %v176_v23  ;;  %493 = vmatpush3.msra.mxu0 %v274_v35 }
  0x49   :  { %494 = vmatprep.subr.mxu0 %v606_v0 }
  0x4a   :  { %495 = vmatpush3.msra.mxu0 %v273_v36 }
  0x4b   :  { %496 = vmatprep.subr.mxu0 %v606_v0 }
  0x4c   :  { %497 = vmatpush3.msra.mxu0 %v272_v46 }
  0x4d   :  { %498 = vmatprep.subr.mxu0 %v606_v0 }
  0x4e   :  { %499 = vmatpush3.msra.mxu0 %v271_v47 }
  0x4f   :  { %500 = vmatprep.subr.mxu0 %v606_v0 }
  0x50   :  { %501 = vmatpush3.msra.mxu0 %v270_v48 }
  0xa4   :  { %v84_v38 = vpop.permute.xlu0 %83 }
  0xa5   :  { %v92_v39 = vmul.f32 %v380_v37, %v84_v38 }
  0xef   :  { %v163_v40 = vpop.f32.mrf.mxu0 }
  0xf0   :  { %v164_v42 = vadd.f32 %v163_v40, %v92_v39 }
  0xf1   :  { %v434_v43 = vpop.f32.mrf.mxu0 }
  0xf2   :  { %v174_v44 = vadd.f32 %v382_v41, %v164_v42 }
  0xf4   :  { %v175_v45 = vmax.f32 %v174_v44, 0.0 }
  0xf6   :  { %468 = vmatmul.mubr.f32.vlgmr.msra.gmra.mxu1 %v175_v45 }
 0x1b6   :  { %v265_v50 = vpop.f32.mrf.mxu1 }
 0x1b7   :  { %v266_v51 = vadd.f32 %v383_v49, %v265_v50 }
 0x1b8   :  { %v469_v52 = vpop.f32.mrf.mxu1 }
 0x1b9   :  { %v269_v53 = vmax.f32 %v266_v51, 0.0 }
 0x1bb   :  { %503 = vmatmul.mubr.f32.vlgmr.msra.gmra.mxu0 %v269_v53 }
 0x27b   :  { %v359_v55 = vpop.f32.mrf.mxu0 }
 0x27c   :  { %v360_v56 = vadd.f32 %v384_v54, %v359_v55 }
 0x27d   :  { %v504_v57 = vpop.f32.mrf.mxu0 }
 0x27e   :  { %363 = vst [vmem:[#allocation8] sm:$0xff] %v360_v56 }
 0x27f   :  { %586 = shalt.err (!%p583_p5)
}
 0x280   :  { %373 = dma.vmem_to_hbm [thread:$0]  %s371_s11, 128, %s741_s9, [#allocation4]  }
 0x281   :  { %599 = dma.done.wait [#allocation4], 128  }
 0x282   :  { %600 = vsyncadd [#allocation4], 4294967168 }
 0x283   :  { %377 = vsyncpa [#allocation3], 1 }
 0x284   :  { %378 = vsyncpa [#allocation6], 1 }
 0x285   :  { %379 = vsyncpa [#allocation4], 1 }

</bundles_post_ra>
